<compile_context>
chip_gen: v7x
topology: tpu7x:2x2x1
jax: 0.10.0
libtpu: 0.0.40
codegen_flags: <defaults>
</compile_context>

<pallas_src>
import functools

import jax
import jax.numpy as jnp
from jax.experimental import pallas as pl
from jax.experimental.pallas import tpu as pltpu


def _ce_kd_kernel(x_ref, y_ref, lbl_ref, o_ref, *, inv_temp, n_rows, tile_rows):
    i = pl.program_id(0)

    # Initialize the resident (1, 2) SMEM accumulator on the first grid step.
    @pl.when(i == 0)
    def _():
        o_ref[0, 0] = 0.0
        o_ref[0, 1] = 0.0

    x = x_ref[...].astype(jnp.float32)          # (TN, C) student logits
    y = y_ref[...].astype(jnp.float32)          # (TN, C) teacher logits
    lbl = lbl_ref[...]                          # (TN, 1) int32 labels

    # ---------------- shared student shift (used by CE and KD) ----------------
    x_max = jnp.max(x, axis=1, keepdims=True)                             # (TN, 1)
    x_sh = x - x_max                                                      # (TN, C)

    # ---------------- KD term (temperature-scaled) ----------------
    # xs = x/T ; since 1/T > 0:  max(xs) = x_max/T, xs - max(xs) = x_sh/T.
    xs_sh = x_sh * inv_temp                                               # (TN, C)
    xs_lse = jnp.log(jnp.sum(jnp.exp(xs_sh), axis=1, keepdims=True))      # (TN, 1)

    ys = y * inv_temp
    ys_max = jnp.max(ys, axis=1, keepdims=True)
    ys_sh = ys - ys_max
    ys_exp = jnp.exp(ys_sh)
    ys_sum = jnp.sum(ys_exp, axis=1, keepdims=True)                       # (TN, 1)

    # row_kd = sum_c q*(ys_sh - xs_sh) - log(ys_sum) + xs_lse,  q = ys_exp / ys_sum.
    # The C-wide divide is eliminated algebraically; the reciprocal only touches
    # the (TN, 1) column, so full precision keeps the scalar loss bit-accurate.
    inv_ys_sum = pl.reciprocal(ys_sum, approx=False)
    kd_row = (jnp.sum(ys_exp * (ys_sh - xs_sh), axis=1, keepdims=True) * inv_ys_sum
              - jnp.log(ys_sum) + xs_lse)                                 # (TN, 1)

    # ---------------- CE term (raw logits, reusing x_sh) ----------------
    x_lse = jnp.log(jnp.sum(jnp.exp(x_sh), axis=1, keepdims=True)) + x_max  # (TN, 1)
    cls = jax.lax.broadcasted_iota(jnp.int32, x.shape, 1)                 # (TN, C)
    x_at_label = jnp.sum(jnp.where(cls == lbl, x, 0.0), axis=1, keepdims=True)
    ce_row = x_lse - x_at_label                                           # (TN, 1)

    # ---------------- mask rows past the true batch size (padded last tile) ----
    row_id = i * tile_rows + jax.lax.broadcasted_iota(jnp.int32, (tile_rows, 1), 0)
    valid = row_id < n_rows
    ce_row = jnp.where(valid, ce_row, 0.0)
    kd_row = jnp.where(valid, kd_row, 0.0)

    o_ref[0, 0] += jnp.sum(ce_row)
    o_ref[0, 1] += jnp.sum(kd_row)


def _pick_tile_rows(n, c):
    # Keep one (TN, C) f32 tile around 2 MiB so (2 inputs x 2 pipeline buffers)
    # plus full-tile f32 temporaries stay well under the 48 MiB scoped-VMEM
    # request on every chip generation, while amortizing the ~0.35 us
    # per-grid-step overhead.
    target_tile_bytes = 2 * 1024 * 1024
    tn = max(1, target_tile_bytes // (4 * c))
    tn = max(8, (min(tn, 1024) // 8) * 8)
    n_padded = ((n + 7) // 8) * 8
    return min(tn, n_padded)


def ce_kd_loss(net_out, teacher_out, batch, *, temp, alpha, block_rows=None):
    """Mirrors CE_KDLoss.forward: returns {'ce_loss', 'kd_loss', 'loss'}."""
    logits = net_out["logits"]
    teacher_logits = teacher_out["logits"]
    labels = batch["label_id"]
    assert logits.shape == teacher_logits.shape and logits.ndim == 2
    n, c = logits.shape
    tn = int(block_rows) if block_rows is not None else _pick_tile_rows(n, c)
    grid = (pl.cdiv(n, tn),)
    labels2d = labels.astype(jnp.int32).reshape(n, 1)

    temp = float(temp)
    alpha = float(alpha)
    kernel = functools.partial(
        _ce_kd_kernel, inv_temp=1.0 / temp, n_rows=n, tile_rows=tn)

    sums = pl.pallas_call(
        kernel,
        out_shape=jax.ShapeDtypeStruct((1, 2), jnp.float32),
        grid_spec=pltpu.PrefetchScalarGridSpec(
            num_scalar_prefetch=0,
            grid=grid,
            in_specs=[
                pl.BlockSpec((tn, c), lambda i: (i, 0)),   # student logits tile
                pl.BlockSpec((tn, c), lambda i: (i, 0)),   # teacher logits tile
                pl.BlockSpec((tn, 1), lambda i: (i, 0)),   # labels tile
            ],
            out_specs=pl.BlockSpec((1, 2), lambda i: (0, 0),
                                   memory_space=pltpu.SMEM),
        ),
        compiler_params=pltpu.CompilerParams(
            dimension_semantics=("arbitrary",),   # reduction into resident output
            vmem_limit_bytes=48 * 1024 * 1024,
        ),
        cost_estimate=pl.CostEstimate(
            flops=int(13 * n * c),
            transcendentals=int(3 * n * c),
            bytes_accessed=int(2 * n * c * logits.dtype.itemsize + 4 * n + 8),
        ),
    )(logits, teacher_logits, labels2d)

    ce_loss = sums[0, 0] / n                        # CrossEntropyLoss mean over batch
    kd_loss = sums[0, 1] / (n * c) * (temp * temp)  # KLDivLoss 'mean' over N*C, * T^2
    loss = (1.0 - alpha) * ce_loss + alpha * kd_loss
    return {"ce_loss": ce_loss, "kd_loss": kd_loss, "loss": loss}


def ce_kd_loss_ref(net_out, teacher_out, batch, *, temp, alpha):
    # Pure-JAX reference mirroring the PyTorch module, for the self-check.
    logits = net_out["logits"].astype(jnp.float32)
    teacher = teacher_out["logits"].astype(jnp.float32)
    labels = batch["label_id"]
    log_probs = jax.nn.log_softmax(logits, axis=1)
    ce = -jnp.mean(jnp.take_along_axis(log_probs, labels[:, None], axis=1))
    x = logits / temp
    y = teacher / temp
    log_p = jax.nn.log_softmax(x, axis=1)
    q = jax.nn.softmax(y, axis=1)
    elem = jnp.where(q == 0.0, 0.0, q * (jnp.log(q) - log_p))
    kd = jnp.mean(elem) * (temp * temp)
    loss = (1.0 - alpha) * ce + alpha * kd
    return {"ce_loss": ce, "kd_loss": kd, "loss": loss}


if __name__ == "__main__":
    temp, alpha = 4.0, 0.7
    key = jax.random.PRNGKey(0)
    k1, k2, k3 = jax.random.split(key, 3)
    # Small shapes consistent with the module: (batch, num_classes) logits + int labels.
    n, c = 30, 128   # batch=30 exercises the padded/masked last row-tile
    net_out = {"logits": jax.random.normal(k1, (n, c), dtype=jnp.float32)}
    teacher_out = {"logits": jax.random.normal(k2, (n, c), dtype=jnp.float32)}
    batch = {"label_id": jax.random.randint(k3, (n,), 0, c, dtype=jnp.int32)}

    # block_rows=8 forces a 4-step grid even at this small size, exercising the
    # pipelined accumulator path; production sizes use the auto tile picker.
    out = ce_kd_loss(net_out, teacher_out, batch, temp=temp, alpha=alpha,
                     block_rows=8)
    jax.block_until_ready(out["loss"])

    ref = ce_kd_loss_ref(net_out, teacher_out, batch, temp=temp, alpha=alpha)
    for k in ("ce_loss", "kd_loss", "loss"):
        assert jnp.allclose(out[k], ref[k], rtol=1e-4, atol=1e-6), (k, out[k], ref[k])
    print("KERNEL_OK")
</pallas_src>

<mosaic_0001>
module attributes {stable_mosaic.version = 11 : i64} {
  func.func @_ce_kd_kernel(%arg0: i32, %arg1: memref<8x128xf32, #tpu.memory_space<vmem>>, %arg2: memref<8x128xf32, #tpu.memory_space<vmem>>, %arg3: memref<8x1xi32, #tpu.memory_space<vmem>>, %arg4: memref<1x2xf32, #tpu.memory_space<smem>>) attributes {dimension_semantics = [#tpu.dimension_semantics<arbitrary>], iteration_bounds = array<i64: 4>, scalar_prefetch = 0 : i64, scratch_operands = 0 : i64, tpu.core_type = #tpu.core_type<tc>, window_params = [{transform_indices = @transform_0, window_bounds = array<i64: 8, 128>}, {transform_indices = @transform_1, window_bounds = array<i64: 8, 128>}, {transform_indices = @transform_2, window_bounds = array<i64: 8, 1>}, {transform_indices = @transform_3, window_bounds = array<i64: 1, 2>}]} {
    %c0_i32 = arith.constant 0 : i32
    %0 = arith.cmpi eq, %arg0, %c0_i32 : i32
    %1 = arith.extui %0 : i1 to i32
    %c0_i32_0 = arith.constant 0 : i32
    %2 = arith.cmpi ne, %1, %c0_i32_0 : i32
    scf.if %2 {
      %cst_26 = arith.constant 0.000000e+00 : f32
      %c0_27 = arith.constant 0 : index
      %c0_28 = arith.constant 0 : index
      %71 = memref.load %arg4[%c0_27, %c0_28] : memref<1x2xf32, #tpu.memory_space<smem>>
      memref.store %cst_26, %arg4[%c0_27, %c0_28] : memref<1x2xf32, #tpu.memory_space<smem>>
      %cst_29 = arith.constant 0.000000e+00 : f32
      %c0_30 = arith.constant 0 : index
      %c1_31 = arith.constant 1 : index
      %72 = memref.load %arg4[%c0_30, %c1_31] : memref<1x2xf32, #tpu.memory_space<smem>>
      memref.store %cst_29, %arg4[%c0_30, %c1_31] : memref<1x2xf32, #tpu.memory_space<smem>>
    } else {
    }
    %c0 = arith.constant 0 : index
    %c0_1 = arith.constant 0 : index
    %3 = vector.load %arg1[%c0, %c0_1] : memref<8x128xf32, #tpu.memory_space<vmem>>, vector<8x128xf32>
    %c0_2 = arith.constant 0 : index
    %c0_3 = arith.constant 0 : index
    %4 = vector.load %arg2[%c0_2, %c0_3] : memref<8x128xf32, #tpu.memory_space<vmem>>, vector<8x128xf32>
    %c0_4 = arith.constant 0 : index
    %c0_5 = arith.constant 0 : index
    %5 = vector.load %arg3[%c0_4, %c0_5] : memref<8x1xi32, #tpu.memory_space<vmem>>, vector<8x1xi32>
    %cst = arith.constant dense<0xFF800000> : vector<8xf32>
    %6 = vector.multi_reduction <maximumf>, %3, %cst [1] : vector<8x128xf32> to vector<8xf32>
    %7 = vector.shape_cast %6 : vector<8xf32> to vector<8x1xf32>
    %8 = vector.broadcast %7 : vector<8x1xf32> to vector<8x128xf32>
    %9 = arith.subf %3, %8 : vector<8x128xf32>
    %cst_6 = arith.constant 2.500000e-01 : f32
    %10 = vector.broadcast %cst_6 : f32 to vector<8x128xf32>
    %11 = arith.mulf %9, %10 : vector<8x128xf32>
    %12 = math.exp %11 : vector<8x128xf32>
    %cst_7 = arith.constant dense<0.000000e+00> : vector<8xf32>
    %13 = vector.multi_reduction <add>, %12, %cst_7 [1] : vector<8x128xf32> to vector<8xf32>
    %14 = vector.shape_cast %13 : vector<8xf32> to vector<8x1xf32>
    %15 = math.log %14 : vector<8x1xf32>
    %cst_8 = arith.constant 2.500000e-01 : f32
    %16 = vector.broadcast %cst_8 : f32 to vector<8x128xf32>
    %17 = arith.mulf %4, %16 : vector<8x128xf32>
    %cst_9 = arith.constant dense<0xFF800000> : vector<8xf32>
    %18 = vector.multi_reduction <maximumf>, %17, %cst_9 [1] : vector<8x128xf32> to vector<8xf32>
    %19 = vector.shape_cast %18 : vector<8xf32> to vector<8x1xf32>
    %20 = vector.broadcast %19 : vector<8x1xf32> to vector<8x128xf32>
    %21 = arith.subf %17, %20 : vector<8x128xf32>
    %22 = math.exp %21 : vector<8x128xf32>
    %cst_10 = arith.constant dense<0.000000e+00> : vector<8xf32>
    %23 = vector.multi_reduction <add>, %22, %cst_10 [1] : vector<8x128xf32> to vector<8xf32>
    %24 = vector.shape_cast %23 : vector<8xf32> to vector<8x1xf32>
    %25 = tpu.reciprocal %24 : vector<8x1xf32> -> vector<8x1xf32>
    %26 = arith.subf %21, %11 : vector<8x128xf32>
    %27 = arith.mulf %22, %26 : vector<8x128xf32>
    %cst_11 = arith.constant dense<0.000000e+00> : vector<8xf32>
    %28 = vector.multi_reduction <add>, %27, %cst_11 [1] : vector<8x128xf32> to vector<8xf32>
    %29 = vector.shape_cast %28 : vector<8xf32> to vector<8x1xf32>
    %30 = arith.mulf %29, %25 : vector<8x1xf32>
    %31 = math.log %24 : vector<8x1xf32>
    %32 = arith.subf %30, %31 : vector<8x1xf32>
    %33 = arith.addf %32, %15 : vector<8x1xf32>
    %34 = math.exp %9 : vector<8x128xf32>
    %cst_12 = arith.constant dense<0.000000e+00> : vector<8xf32>
    %35 = vector.multi_reduction <add>, %34, %cst_12 [1] : vector<8x128xf32> to vector<8xf32>
    %36 = vector.shape_cast %35 : vector<8xf32> to vector<8x1xf32>
    %37 = math.log %36 : vector<8x1xf32>
    %38 = arith.addf %37, %7 : vector<8x1xf32>
    %39 = tpu.iota {dimensions = array<i32: 1>} : vector<8x128xi32>
    %40 = vector.broadcast %5 : vector<8x1xi32> to vector<8x128xi32>
    %41 = arith.cmpi eq, %39, %40 : vector<8x128xi32>
    %cst_13 = arith.constant 0.000000e+00 : f32
    %42 = vector.broadcast %cst_13 : f32 to vector<8x128xf32>
    %43 = arith.select %41, %3, %42 : vector<8x128xi1>, vector<8x128xf32>
    %cst_14 = arith.constant dense<0.000000e+00> : vector<8xf32>
    %44 = vector.multi_reduction <add>, %43, %cst_14 [1] : vector<8x128xf32> to vector<8xf32>
    %45 = vector.shape_cast %44 : vector<8xf32> to vector<8x1xf32>
    %46 = arith.subf %38, %45 : vector<8x1xf32>
    %c8_i32 = arith.constant 8 : i32
    %47 = arith.muli %arg0, %c8_i32 : i32
    %48 = tpu.iota {dimensions = array<i32: 0>} : vector<8x1xi32>
    %49 = vector.broadcast %47 : i32 to vector<8x1xi32>
    %50 = arith.addi %49, %48 : vector<8x1xi32>
    %c30_i32 = arith.constant 30 : i32
    %51 = vector.broadcast %c30_i32 : i32 to vector<8x1xi32>
    %52 = arith.cmpi slt, %50, %51 : vector<8x1xi32>
    %cst_15 = arith.constant 0.000000e+00 : f32
    %53 = vector.broadcast %cst_15 : f32 to vector<8x1xf32>
    %54 = arith.select %52, %46, %53 : vector<8x1xi1>, vector<8x1xf32>
    %cst_16 = arith.constant 0.000000e+00 : f32
    %55 = vector.broadcast %cst_16 : f32 to vector<8x1xf32>
    %56 = arith.select %52, %33, %55 : vector<8x1xi1>, vector<8x1xf32>
    %c0_17 = arith.constant 0 : index
    %c0_18 = arith.constant 0 : index
    %57 = memref.load %arg4[%c0_17, %c0_18] : memref<1x2xf32, #tpu.memory_space<smem>>
    %58 = vector.shape_cast %54 : vector<8x1xf32> to vector<1x8x1xf32>
    %cst_19 = arith.constant dense<0.000000e+00> : vector<1xf32>
    %59 = vector.multi_reduction <add>, %58, %cst_19 [1, 2] : vector<1x8x1xf32> to vector<1xf32>
    %60 = vector.shape_cast %59 : vector<1xf32> to vector<1x1x1xf32>
    %61 = vector.extract %60[0, 0, 0] : f32 from vector<1x1x1xf32>
    %62 = arith.addf %57, %61 : f32
    %c0_20 = arith.constant 0 : index
    %c0_21 = arith.constant 0 : index
    %63 = memref.load %arg4[%c0_20, %c0_21] : memref<1x2xf32, #tpu.memory_space<smem>>
    memref.store %62, %arg4[%c0_20, %c0_21] : memref<1x2xf32, #tpu.memory_space<smem>>
    %c0_22 = arith.constant 0 : index
    %c1 = arith.constant 1 : index
    %64 = memref.load %arg4[%c0_22, %c1] : memref<1x2xf32, #tpu.memory_space<smem>>
    %65 = vector.shape_cast %56 : vector<8x1xf32> to vector<1x8x1xf32>
    %cst_23 = arith.constant dense<0.000000e+00> : vector<1xf32>
    %66 = vector.multi_reduction <add>, %65, %cst_23 [1, 2] : vector<1x8x1xf32> to vector<1xf32>
    %67 = vector.shape_cast %66 : vector<1xf32> to vector<1x1x1xf32>
    %68 = vector.extract %67[0, 0, 0] : f32 from vector<1x1x1xf32>
    %69 = arith.addf %64, %68 : f32
    %c0_24 = arith.constant 0 : index
    %c1_25 = arith.constant 1 : index
    %70 = memref.load %arg4[%c0_24, %c1_25] : memref<1x2xf32, #tpu.memory_space<smem>>
    memref.store %69, %arg4[%c0_24, %c1_25] : memref<1x2xf32, #tpu.memory_space<smem>>
    return
  }
  func.func @transform_0(%arg0: i32) -> (i32, i32) {
    %c0_i32 = arith.constant 0 : i32
    %c0_i32_0 = arith.constant 0 : i32
    return %arg0, %c0_i32 : i32, i32
  }
  func.func @transform_1(%arg0: i32) -> (i32, i32) {
    %c0_i32 = arith.constant 0 : i32
    %c0_i32_0 = arith.constant 0 : i32
    return %arg0, %c0_i32 : i32, i32
  }
  func.func @transform_2(%arg0: i32) -> (i32, i32) {
    %c0_i32 = arith.constant 0 : i32
    %c0_i32_0 = arith.constant 0 : i32
    return %arg0, %c0_i32 : i32, i32
  }
  func.func @transform_3(%arg0: i32) -> (i32, i32) {
    %c0_i32 = arith.constant 0 : i32
    %c0_i32_0 = arith.constant 0 : i32
    %c0_i32_1 = arith.constant 0 : i32
    return %c0_i32, %c0_i32_0 : i32, i32
  }
}

</mosaic_0001>

<bundles_post_ra>
// kernel: tpu_custom_call.1
= control target key start
LH: loop header
LB: loop body
LE: loop exit
PB: predicated region body
PF: predicated region fallthrough
CT: control target
= control target key end

     0   :  { %8 = vsyncpa [#allocation3], 0  ;;  %s705_s0 = inlined_call_operand.vmem [shape: f32[30,128], index: 0, kind: input, shape index: {}]   ;;  %s706_s1 = inlined_call_operand.hbm [shape: f32[30,128], index: 1, kind: input, shape index: {}]   ;;  %s707_s2 = inlined_call_operand.vmem [shape: s32[30,1], index: 2, kind: input, shape index: {}]   ;;  %s708_s3 = inlined_call_operand.hbm [shape: f32[1,2], index: 3, kind: output, shape index: {}]  }
   0x1   :  { %10 = vsyncpa [#allocation3 + $0x1], 0 }
   0x2   :  { %11 = vsyncpa [#allocation4], 0  ;;  %s575_s12 = smov 0   ;;  %s577_s13 = smov 0  }
   0x3   :  { %s579_s14 = smov 0   ;;  %s581_s15 = smov 0  }
   0x4 LB: > { %s594_s16 = sadd.s32 4294967295, %s549_s15   ;;  %s597_s17 = sadd.s32 1, %s549_s15   ;;  %s549_s15 = sphi %s581_s15, %s719_s15   ;;  %s545_s14 = sphi %s579_s14, %s718_s14   ;;  %s541_s13 = sphi %s577_s13, %s717_s13   ;;  %s537_s12 = sphi %s575_s12, %s716_s12  }
   0x5   : > { %s47_s18 = ssub.s32 %s549_s15, %s597_s17  ;;  %s50_s19 = sadd.s32 1, %s545_s14 }
   0x6   : > { %p48_p0 = scmp.eq.s32.totalorder %s47_s18, 0  ;;  %p57_p1 = scmp.ne.s32.totalorder %s545_s14, %s541_s13 }
   0x7   : > { %p58_p2 = scmp.eq.s32.totalorder %s549_s15, 0  ;;  %p63_p3 = scmp.ne.s32.totalorder %s541_s13, %s537_s12 }
   0x8   : > { %s607_s20 = scalar_select %p48_p0, %s545_s14, %s50_s19  }
   0x9   : > { %p59_p4 = por %p58_p2, %p57_p1  ;;  %p709_p5 = scmp.eq.s32.totalorder %s594_s16, 0 }
   0xa   : > { %p414_p6 = scmp.lt.s32.totalorder %s549_s15, 4  ;;  %s141_s22 = sand.u32 1, %s545_s14  }
   0xb   : > { %p613_p7 = por %p709_p5, %p63_p3  ;;  %s384_s23 = sshll.u32 %s141_s22, 3 }
   0xc   : > { %s385_s24 = sshll.u32 %s549_s15, 7  ;;  %s145_s28 = scalar_lea.vmem [#allocation2], %s384_s23 }
   0xd   : > { %s622_s27 = scalar_lea.hbm %s706_s1, %s385_s24  ;;  %s152_s29 = sshll.u32 %s145_s28, 4  ;;  %s624_s29 = int_to_ptr.vmem [resolvable:$true] %s152_s29 }
   0xe   : > { %p626_p8 = pnand %p414_p6, %p59_p4  ;;  %s142_s4 = scalar_lea.sflag [#allocation3], %s141_s22 }
   0xf   : > { %s469_s5 = scalar_lea.hbm %s622_s27, 128  ;;  %s474_s8 = scalar_lea.hbm %s706_s1, 512 }
  0x10   : > { %p470_p11 = scmp.ne.s32.totalorder %s622_s27, %s469_s5  ;;  %p471_p12 = pneg %p626_p8 }
  0x11   : > { %p475_p1 = scmp.lt.u32.totalorder %s622_s27, %s706_s1  ;;  %p476_p2 = scmp.lt.u32.totalorder %s474_s8, %s469_s5 }
  0x12   : > { %p472_p13 = pnand %p471_p12, %p470_p11  ;;  %p478_p4 = scmp.lt.u32.totalorder %s469_s5, %s622_s27 }
  0x13   : > { %p477_p3 = por %p476_p2, %p475_p1 }
  0x14   : > { %p473_p0 = pneg %p472_p13 }
  0x15   : > { %p479_p6 = por %p478_p4, %p477_p3 }
  0x17   : > { %p480_p5 = pnand %p479_p6, %p473_p0 }
  0x19   : > { %483 = shalt.err (!%p480_p5)
}
  0x1a   : > { %s484_s11 = scalar_lea.vmem %s624_s29, 128  ;;  %s551_s12 = smov [#allocation2]  }
  0x1b   : > { %p485_p11 = scmp.ne.s32.totalorder %s624_s29, %s484_s11  ;;  %s489_s18 = sshll.u32 %s551_s12, 4  ;;  %s490_s18 = int_to_ptr.vmem [resolvable:$false] %s489_s18 }
  0x1c   : > { %s491_s19 = scalar_lea.vmem %s490_s18, 256  ;;  %p492_p10 = scmp.lt.s32.totalorder %s624_s29, %s490_s18 }
  0x1d   : > { %p487_p13 = pnand %p485_p11, %p471_p12  ;;  %p493_p1 = scmp.lt.s32.totalorder %s491_s19, %s484_s11 }
  0x1f   : > { %p488_p9 = pneg %p487_p13  ;;  %p494_p2 = por %p493_p1, %p492_p10 }
  0x21   : > { %p495_p3 = pnand %p494_p2, %p488_p9 }
  0x23   : > { %498 = shalt.err (!%p495_p3)
}
  0x24   : > { %413 = dma.hbm_to_vmem [thread:$0]  (!%p626_p8), %s622_s27, 128, %s624_s29, %s142_s4  }
  0x25   : > { %p712_p5 = scmp.lt.s32.totalorder %s549_s15, 5  ;;  %p713_p0 = scmp.ge.s32.totalorder %s549_s15, 1 }
  0x27   : > { %p165_p12 = pnand %p713_p0, %p712_p5 }
  0x28   : > { %s170_s22 = sand.u32 (!%p165_p12), 1, %s541_s13  }
  0x29   : > { %168 = sbr.rel (%p165_p12) target bundleno = 592 (0x250), region = 32  ;;  %s387_s23 = sshll.u32 (!%p165_p12), %s170_s22, 3 }
  0x2a   : > { %s171_s24 = scalar_lea.sflag (!%p165_p12), [#allocation3], %s170_s22  ;;  %s174_s25 = scalar_lea.vmem (!%p165_p12), [#allocation2], %s387_s23 }
  0x30   : > { %528 = dma.done.wait (%p613_p7), %s171_s24, 128  }
  0x31   : > { %530 = vsyncadd (%p613_p7), %s171_s24, 4294967168  ;;  %p200_p9 = scmp.lt.s32.totalorder %s594_s16, 3  ;;  %v552_v0 = vmov 0   ;;  %v217_v2 = vld [vmem:[%s174_s25] sm:$0xff]  ;;  %v254_v13 = vlaneseq  ;;  %s391_s21 = sshll.u32 %s594_s16, 3  ;;  %vm273_vm2 = vcmask 7168  }
  0x32   : > { %453 = vset.pattern.permute.xlu1 %v552_v0  ;;  %454 = vset.pattern.permute.xlu0 %v552_v0  ;;  %v229_v4 = vmul.f32 0.25, %v217_v2  ;;  %v267_v26 = vstv %s391_s21  ;;  %s553_s6 = smov 0.0   ;;  %p714_p7 = scmp.eq.s32.totalorder %s594_s16, 0 }
  0x33   : > { %s201_s15 = scalar_select %p200_p9, %s594_s16, 3  ;;  %v255_v16 = vand.u32 127, %v254_v13  ;;  %v266_v25 = vshrl.u32 %v254_v13, 7 }
  0x34   : > { %404 = sst [smem:[#allocation5]] (%p714_p7), %s553_s6  ;;  %p715_p8 = pmov %p714_p7 }
  0x35   : > { %s388_s26 = sshll.u32 %s201_s15, 3  ;;  %v268_v29 = vadd.s32 %v267_v26, %v266_v25  ;;  %s272_s7 = sld [smem:[#allocation5]] }
  0x36   : > { %s203_s29 = scalar_lea.vmem %s705_s0, %s388_s26  ;;  %s207_s5 = scalar_lea.vmem %s707_s2, %s388_s26 }
  0x37   : > { %v216_v1 = vld [vmem:[%s203_s29] sm:$0xff]  ;;  %vm269_vm1 = vcmp.lt.s32.totalorder %v268_v29, 30  ;;  %405 = sst [smem:[#allocation5 + $0x1]] (%p715_p8), %s553_s6  ;;  %p416_p10 = scmp.eq.s32.totalorder %s594_s16, 3 }
  0x38   : > { %v218_v3 = vld [vmem:[%s207_s5] sm:$0xff]  ;;  %219 = vmax.xlane.f32.xlu0 %v216_v1  ;;  %s392_s8 = sld [smem:[#allocation5 + $0x1]]  ;;  %s499_s22 = scalar_lea.hbm %s708_s3, 16 }
  0x39   : > { %257 = vperm.xlu1 %453, %v218_v3   ;;  %p500_p4 = scmp.ne.s32.totalorder %s708_s3, %s499_s22  ;;  %p505_p13 = scmp.lt.u32.totalorder %s499_s22, %s708_s3 }
  0x3b   : > { %p501_p6 = pnand %p500_p4, %p416_p10 }
  0x3c   : > { %230 = vmax.xlane.f32.xlu0 %v229_v4 }
  0x3d   : > { %p502_p11 = pneg %p501_p6 }
  0x3f   : > { %p507_p1 = pnand %p505_p13, %p502_p11 }
  0xb8   : > { %v258_v18 = vpop.permute.xlu1 %257 }
  0xb9   : > { %vm259_vm0 = vcmp.eq.s32.totalorder %v255_v16, %v258_v18 }
  0xba   : > { %v260_v21 = vsel %vm259_vm0, %v216_v1, 0.0 }
  0xc5   : > { %v220_v5 = vpop.xlane.xlu0 %219 }
  0xc6   : > { %v221_v6 = vsub.f32 %v216_v1, %v220_v5 }
  0xc8   : > { %v222_v7 = vmul.f32 0.25, %v221_v6  ;;  %v247_v8 = vmul.f32 1.442695, %v221_v6 }
  0xc9   : > { %v231_v9 = vpop.xlane.xlu0 %230 }
  0xca   : > { %v223_v10 = vmul.f32 1.442695, %v222_v7  ;;  %455 = vpow2.f32 %v247_v8  ;;  %v232_v11 = vsub.f32 %v229_v4, %v231_v9 }
  0xcc   : > { %v233_v12 = vmul.f32 1.442695, %v232_v11  ;;  %457 = vpow2.f32 %v223_v10  ;;  %v238_v19 = vsub.f32 %v232_v11, %v222_v7 }
  0xce   : > { %459 = vpow2.f32 %v233_v12 }
  0xd4   : > { %v456_v14 = vpop.eup %455 }
  0xd5   : > { %249 = vadd.xlane.f32.xlu0 %v456_v14 }
  0xd6   : > { %v458_v15 = vpop.eup %457 }
  0xd8   : > { %v460_v17 = vpop.eup %459 }
  0xd9   : > { %225 = vadd.xlane.f32.xlu0 %v458_v15  ;;  %235 = vadd.xlane.f32.xlu1 %v460_v17  ;;  %v239_v20 = vmul.f32 %v460_v17, %v238_v19 }
  0xdd   : > { %240 = vadd.xlane.f32.xlu0 %v239_v20 }
  0xe1   : > { %261 = vadd.xlane.f32.xlu0 %v260_v21 }
 0x162   : > { %v250_v22 = vpop.xlane.xlu0 %249 }
 0x163   : > { %461 = vlog2.f32 %v250_v22 }
 0x166   : > { %v236_v23 = vpop.xlane.xlu1 %235  ;;  %v226_v24 = vpop.xlane.xlu0 %225 }
 0x167   : > { %463 = vrcp.f32 %v236_v23 }
 0x168   : > { %465 = vlog2.f32 %v236_v23 }
 0x169   : > { %467 = vlog2.f32 %v226_v24 }
 0x16a   : > { %v241_v27 = vpop.xlane.xlu0 %240 }
 0x16d   : > { %v462_v28 = vpop.eup %461 }
 0x16e   : > { %v252_v30 = vmul.f32 0.6931472, %v462_v28  ;;  %v262_v31 = vpop.xlane.xlu0 %261 }
 0x170   : > { %v253_v32 = vadd.f32 %v252_v30, %v220_v5 }
 0x171   : > { %v464_v33 = vpop.eup %463 }
 0x172   : > { %v466_v34 = vpop.eup %465  ;;  %v242_v35 = vmul.f32 %v464_v33, %v241_v27  ;;  %v263_v36 = vsub.f32 %v253_v32, %v262_v31 }
 0x173   : > { %v468_v37 = vpop.eup %467  ;;  %v244_v38 = vmul.f32 0.6931472, %v466_v34 }
 0x174   : > { %v270_v39 = vsel %vm269_vm1, %v263_v36, 0.0  ;;  %v228_v40 = vmul.f32 0.6931472, %v468_v37 }
 0x175   : > { %v245_v41 = vsub.f32 %v242_v35, %v244_v38  ;;  %v274_v42 = vsel %vm273_vm2, %v270_v39, 0.0 }
 0x176   : > { %275 = vadd.xlane.f32.xlu0 %v274_v42 }
 0x177   : > { %v246_v43 = vadd.f32 %v245_v41, %v228_v40 }
 0x179   : > { %v271_v44 = vsel %vm269_vm1, %v246_v43, 0.0 }
 0x17a   : > { %v288_v45 = vsel %vm273_vm2, %v271_v44, 0.0 }
 0x17b   : > { %289 = vadd.xlane.f32.xlu0 %v288_v45 }
 0x203   : > { %v276_v46 = vpop.xlane.xlu0 %275 }
 0x204   : > { %v277_v47 = vrot.slane %v276_v46, 4 }
 0x206   : > { %v278_v48 = vadd.f32 %v277_v47, %v276_v46 }
 0x208   : > { %v279_v49 = vrot.slane %v278_v48, 2  ;;  %v290_v50 = vpop.xlane.xlu0 %289 }
 0x209   : > { %v291_v51 = vrot.slane %v290_v50, 4 }
 0x20a   : > { %v280_v52 = vadd.f32 %v279_v49, %v278_v48 }
 0x20b   : > { %v292_v53 = vadd.f32 %v291_v51, %v290_v50 }
 0x20c   : > { %v281_v54 = vrot.slane %v280_v52, 1 }
 0x20d   : > { %v293_v55 = vrot.slane %v292_v53, 2 }
 0x20e   : > { %v282_v56 = vadd.f32 %v281_v54, %v280_v52 }
 0x20f   : > { %v294_v57 = vadd.f32 %v293_v55, %v292_v53 }
 0x210   : > { %397 = vpush %v282_v56 }
 0x211   : > { %v295_v58 = vrot.slane %v294_v57, 1 }
 0x213   : > { %v296_v59 = vadd.f32 %v295_v58, %v294_v57 }
 0x215   : > { %399 = vpush %v296_v59 }
 0x241   : > { %s398_s9 = spop %397 }
 0x242   : > { %s284_s10 = sadd.f32 %s398_s9, %s272_s7 }
 0x244   : > { %286 = sst [smem:[#allocation5]] %s284_s10 }
 0x246   : > { %s400_s11 = spop %399 }
 0x247   : > { %s298_s12 = sadd.f32 %s400_s11, %s392_s8 }
 0x249   : > { %300 = sst [smem:[#allocation5 + $0x1]] %s298_s12 }
 0x24a   : > { %510 = shalt.err (!%p507_p1)
}
 0x24b   : > { %s554_s26 = smov [#allocation5]  }
 0x24c   : > { %407 = dma.smem_to_hbm (%p416_p10), %s554_s26, 16, %s708_s3, [#allocation4]  }
 0x24d   : > { %532 = dma.done.wait (%p416_p10), [#allocation4], 16  }
 0x24e   : > { %534 = vsyncadd (%p416_p10), [#allocation4], 4294967280 }
 0x24f   : > { %314 = sfence }
 0x250 PF: > { %p14_p2 = scmp.ge.s32.totalorder %s597_s17, 6   ;;  %s716_s12 = smov %s541_s13 }
 0x251   : > { %s717_s13 = smov %s545_s14  ;;  %s718_s14 = smov %s607_s20 }
 0x252   : > { %s719_s15 = smov %s597_s17  ;;  %16 = sbr.rel (!%p14_p2) target bundleno = 4 (0x4), region = 83 }
 0x259   :  { %320 = vsyncpa [#allocation3], 1 }
 0x25a   :  { %322 = vsyncpa [#allocation3 + $0x1], 1 }
 0x25b   :  { %323 = vsyncpa [#allocation4], 1 }
 0x25c   :  { %325 = vsyncpa [#allocation4 + $0x1], 1 }

</bundles_post_ra>
